<compile_context>
chip_gen: v7x
topology: tpu7x:2x2x1
jax: 0.10.0
libtpu: 0.0.40
codegen_flags: <defaults>
</compile_context>

<pallas_src>
import functools

import jax
import jax.numpy as jnp
from jax.experimental import pallas as pl
from jax.experimental.pallas import tpu as pltpu

# ---------------- model config (matches PINN(num_hidden, dim_hidden)) ----------
NUM_HIDDEN = 3            # total hidden layers => NUM_HIDDEN - 1 middle layers
DIM_HIDDEN = 128          # hidden width
NUM_MID = NUM_HIDDEN - 1  # number of middle Linear(H, H) layers


def _choose_tile(n, target=1024):
    """Largest multiple-of-128 divisor of n that is <= min(target, n // 2).

    Capping at n // 2 keeps the parallel grid length >= 2 (both v7x TensorCores
    busy); falls back to n itself for tiny batches.
    """
    cap = min(target, max(128, n // 2))
    for t in range(cap - cap % 128, 0, -128):
        if n % t == 0:
            return t
    return n


def _pinn_kernel(num_mid, use_bf16,
                 x_ref, y_ref, t_ref,
                 w_in_ref, b_in_ref,
                 w_mid_ref, b_mid_ref,
                 w_out_ref, b_out_ref,
                 o_ref):
    # Lane-dense batch rows: (1, tile)
    x_row = x_ref[0]
    y_row = y_ref[0]
    t_row = t_ref[0]

    # ---- input layer: Linear(3, H) as three broadcast FMAs (VPU), then tanh.
    # Activations are transposed: h has shape (H, tile).
    h = (w_in_ref[:, 0:1] * x_row
         + w_in_ref[:, 1:2] * y_row
         + w_in_ref[:, 2:3] * t_row
         + b_in_ref[...])
    h = jnp.tanh(h)

    # ---- middle layers: (H, H) @ (H, tile) on the MXU, static unroll (num_mid small)
    for l in range(num_mid):
        w = w_mid_ref[l]                      # (H, H), PyTorch (out, in) layout
        if use_bf16:
            z = jnp.dot(w, h.astype(jnp.bfloat16),
                        preferred_element_type=jnp.float32)
        else:
            z = jnp.dot(w, h, preferred_element_type=jnp.float32)
        h = jnp.tanh(z + b_mid_ref[l])        # b_mid_ref[l]: (H, 1) column broadcast

    # ---- output layer: Linear(H, 1) as VPU multiply + sublane reduce
    # -> lane-dense (1, tile) row (no 1-wide MXU matmul, no masked column store)
    logits = jnp.sum(h * w_out_ref[...], axis=0, keepdims=True) + b_out_ref[0, 0]
    o_ref[0] = logits.astype(o_ref.dtype)


def pinn_forward(x, y, t, params, *, tile=None, use_bf16=False):
    """x, y, t: (N, 1) float32 column vectors.  Returns (N, 1) logits."""
    w_in, b_in, w_mid, b_mid, w_out, b_out = params
    n = x.shape[0]
    h = w_in.shape[0]
    num_mid = w_mid.shape[0]

    if tile is None:
        tile = _choose_tile(n)
    assert n % tile == 0, "batch must be a multiple of the tile size"
    nb = n // tile

    # Free, layout-preserving reshapes (no HBM round trip): (N, 1) -> (nb, 1, tile)
    xr = x.reshape(nb, 1, tile).astype(jnp.float32)
    yr = y.reshape(nb, 1, tile).astype(jnp.float32)
    tr = t.reshape(nb, 1, tile).astype(jnp.float32)

    w_mid_k = w_mid.astype(jnp.bfloat16) if use_bf16 else w_mid

    kernel = functools.partial(_pinn_kernel, num_mid, use_bf16)

    out = pl.pallas_call(
        kernel,
        out_shape=jax.ShapeDtypeStruct((nb, 1, tile), jnp.float32),
        grid_spec=pltpu.PrefetchScalarGridSpec(
            num_scalar_prefetch=0,
            grid=(nb,),
            in_specs=[
                pl.BlockSpec((1, 1, tile), lambda i: (i, 0, 0)),      # x row
                pl.BlockSpec((1, 1, tile), lambda i: (i, 0, 0)),      # y row
                pl.BlockSpec((1, 1, tile), lambda i: (i, 0, 0)),      # t row
                pl.BlockSpec((h, 3), lambda i: (0, 0)),               # w_in  (H, 3)
                pl.BlockSpec((h, 1), lambda i: (0, 0)),               # b_in  (H, 1)
                pl.BlockSpec((num_mid, h, h), lambda i: (0, 0, 0)),   # w_mid stack
                pl.BlockSpec((num_mid, h, 1), lambda i: (0, 0, 0)),   # b_mid stack
                pl.BlockSpec((h, 1), lambda i: (0, 0)),               # w_out (H, 1)
                pl.BlockSpec(memory_space=pltpu.MemorySpace.SMEM),    # b_out scalar
            ],
            out_specs=pl.BlockSpec((1, 1, tile), lambda i: (i, 0, 0)),
        ),
        compiler_params=pltpu.CompilerParams(
            dimension_semantics=("parallel",),
        ),
    )(xr, yr, tr, w_in, b_in, w_mid_k, b_mid, w_out, b_out)
    return out.reshape(n, 1)


def init_params(key, dim_hidden=DIM_HIDDEN, num_mid=NUM_MID):
    """Deterministic synthetic init mimicking nn.Linear's U(-1/sqrt(fan_in), +)."""
    ks = jax.random.split(key, 6)

    def uni(k, shape, fan_in):
        bound = 1.0 / jnp.sqrt(jnp.float32(fan_in))
        return jax.random.uniform(k, shape, jnp.float32, -bound, bound)

    # layer_in: Linear(3, H) — PyTorch (out, in) weight layout
    w_in = uni(ks[0], (dim_hidden, 3), 3)
    b_in = uni(ks[1], (dim_hidden, 1), 3)
    # middle layers: Linear(H, H) x num_mid, PyTorch (out, in) layout, stacked
    w_mid = uni(ks[2], (num_mid, dim_hidden, dim_hidden), dim_hidden)
    b_mid = uni(ks[3], (num_mid, dim_hidden, 1), dim_hidden)
    # layer_out: Linear(H, 1) — stored as (H, 1) column (weight transposed)
    w_out = uni(ks[4], (dim_hidden, 1), dim_hidden)
    b_out = uni(ks[5], (1, 1), dim_hidden)
    return (w_in, b_in, w_mid, b_mid, w_out, b_out)


def pinn_reference(x, y, t, params):
    """Pure-JAX reference matching the PyTorch forward."""
    w_in, b_in, w_mid, b_mid, w_out, b_out = params
    xyt = jnp.concatenate([x, y, t], axis=1)                     # (N, 3)
    out = jnp.tanh(xyt @ w_in.T + b_in[:, 0][None, :])
    for l in range(w_mid.shape[0]):
        out = jnp.tanh(out @ w_mid[l].T + b_mid[l, :, 0][None, :])
    return out @ w_out + b_out[0, 0]


if __name__ == "__main__":
    key = jax.random.PRNGKey(0)
    kx, ky, kp = jax.random.split(key, 3)

    N = 256
    x = jax.random.uniform(kx, (N, 1), jnp.float32)
    y = jax.random.uniform(ky, (N, 1), jnp.float32)
    t_value = 0.0
    t = jnp.full_like(x, t_value)          # t = torch.full_like(x, t_value)

    params = init_params(kp)

    logits = pinn_forward(x, y, t, params)   # tile=128 -> grid=(2,) here
    logits = jax.block_until_ready(logits)

    ref = pinn_reference(x, y, t, params)
    assert logits.shape == (N, 1)
    assert jnp.allclose(logits, ref, atol=2e-5, rtol=2e-5), "mismatch vs reference"

    print("KERNEL_OK")
</pallas_src>

<mosaic_0001>
module attributes {stable_mosaic.version = 11 : i64} {
  func.func @_pinn_kernel(%arg0: i32, %arg1: memref<1x1x128xf32, #tpu.memory_space<vmem>>, %arg2: memref<1x1x128xf32, #tpu.memory_space<vmem>>, %arg3: memref<1x1x128xf32, #tpu.memory_space<vmem>>, %arg4: memref<128x3xf32, #tpu.memory_space<vmem>>, %arg5: memref<128x1xf32, #tpu.memory_space<vmem>>, %arg6: memref<2x128x128xf32, #tpu.memory_space<vmem>>, %arg7: memref<2x128x1xf32, #tpu.memory_space<vmem>>, %arg8: memref<128x1xf32, #tpu.memory_space<vmem>>, %arg9: memref<1x1xf32, #tpu.memory_space<smem>>, %arg10: memref<1x1x128xf32, #tpu.memory_space<vmem>>) attributes {dimension_semantics = [#tpu.dimension_semantics<parallel>], iteration_bounds = array<i64: 2>, scalar_prefetch = 0 : i64, scratch_operands = 0 : i64, tpu.core_type = #tpu.core_type<tc>, window_params = [{transform_indices = @transform_0, window_bounds = array<i64: 1, 1, 128>}, {transform_indices = @transform_1, window_bounds = array<i64: 1, 1, 128>}, {transform_indices = @transform_2, window_bounds = array<i64: 1, 1, 128>}, {pipeline_mode = #tpu.pipeline_mode<synchronous>, transform_indices = @transform_3, window_bounds = array<i64: 128, 3>}, {pipeline_mode = #tpu.pipeline_mode<synchronous>, transform_indices = @transform_4, window_bounds = array<i64: 128, 1>}, {pipeline_mode = #tpu.pipeline_mode<synchronous>, transform_indices = @transform_5, window_bounds = array<i64: 2, 128, 128>}, {pipeline_mode = #tpu.pipeline_mode<synchronous>, transform_indices = @transform_6, window_bounds = array<i64: 2, 128, 1>}, {pipeline_mode = #tpu.pipeline_mode<synchronous>, transform_indices = @transform_7, window_bounds = array<i64: 128, 1>}, {transform_indices = @transform_8, window_bounds = array<i64: 1, 1>}, {transform_indices = @transform_9, window_bounds = array<i64: 1, 1, 128>}]} {
    %c0 = arith.constant 0 : index
    %c0_0 = arith.constant 0 : index
    %c0_1 = arith.constant 0 : index
    %0 = vector.load %arg1[%c0, %c0_0, %c0_1] : memref<1x1x128xf32, #tpu.memory_space<vmem>>, vector<1x1x128xf32>
    %1 = vector.shape_cast %0 : vector<1x1x128xf32> to vector<1x128xf32>
    %c0_2 = arith.constant 0 : index
    %c0_3 = arith.constant 0 : index
    %c0_4 = arith.constant 0 : index
    %2 = vector.load %arg2[%c0_2, %c0_3, %c0_4] : memref<1x1x128xf32, #tpu.memory_space<vmem>>, vector<1x1x128xf32>
    %3 = vector.shape_cast %2 : vector<1x1x128xf32> to vector<1x128xf32>
    %c0_5 = arith.constant 0 : index
    %c0_6 = arith.constant 0 : index
    %c0_7 = arith.constant 0 : index
    %4 = vector.load %arg3[%c0_5, %c0_6, %c0_7] : memref<1x1x128xf32, #tpu.memory_space<vmem>>, vector<1x1x128xf32>
    %5 = vector.shape_cast %4 : vector<1x1x128xf32> to vector<1x128xf32>
    %c0_8 = arith.constant 0 : index
    %c0_9 = arith.constant 0 : index
    %6 = vector.load %arg4[%c0_8, %c0_9] : memref<128x3xf32, #tpu.memory_space<vmem>>, vector<128x1xf32>
    %7 = vector.broadcast %6 : vector<128x1xf32> to vector<128x128xf32>
    %8 = vector.broadcast %1 : vector<1x128xf32> to vector<128x128xf32>
    %9 = arith.mulf %7, %8 : vector<128x128xf32>
    %c0_10 = arith.constant 0 : index
    %c1 = arith.constant 1 : index
    %10 = vector.load %arg4[%c0_10, %c1] : memref<128x3xf32, #tpu.memory_space<vmem>>, vector<128x1xf32>
    %11 = vector.broadcast %10 : vector<128x1xf32> to vector<128x128xf32>
    %12 = vector.broadcast %3 : vector<1x128xf32> to vector<128x128xf32>
    %13 = arith.mulf %11, %12 : vector<128x128xf32>
    %14 = arith.addf %9, %13 : vector<128x128xf32>
    %c0_11 = arith.constant 0 : index
    %c2 = arith.constant 2 : index
    %15 = vector.load %arg4[%c0_11, %c2] : memref<128x3xf32, #tpu.memory_space<vmem>>, vector<128x1xf32>
    %16 = vector.broadcast %15 : vector<128x1xf32> to vector<128x128xf32>
    %17 = vector.broadcast %5 : vector<1x128xf32> to vector<128x128xf32>
    %18 = arith.mulf %16, %17 : vector<128x128xf32>
    %19 = arith.addf %14, %18 : vector<128x128xf32>
    %c0_12 = arith.constant 0 : index
    %c0_13 = arith.constant 0 : index
    %20 = vector.load %arg5[%c0_12, %c0_13] : memref<128x1xf32, #tpu.memory_space<vmem>>, vector<128x1xf32>
    %21 = vector.broadcast %20 : vector<128x1xf32> to vector<128x128xf32>
    %22 = arith.addf %19, %21 : vector<128x128xf32>
    %23 = math.tanh %22 : vector<128x128xf32>
    %c0_14 = arith.constant 0 : index
    %c0_15 = arith.constant 0 : index
    %c0_16 = arith.constant 0 : index
    %24 = vector.load %arg6[%c0_14, %c0_15, %c0_16] : memref<2x128x128xf32, #tpu.memory_space<vmem>>, vector<1x128x128xf32>
    %25 = vector.shape_cast %24 : vector<1x128x128xf32> to vector<128x128xf32>
    %cst = arith.constant dense<0.000000e+00> : vector<128x128xf32>
    %26 = tpu.matmul %25, %23, %cst {dimension_numbers = #tpu.dot_dimension_numbers<[1], [0], [0], [1], [0, 0, 1, 1], [], []>} : vector<128x128xf32>, vector<128x128xf32>, vector<128x128xf32> -> vector<128x128xf32>
    %c0_17 = arith.constant 0 : index
    %c0_18 = arith.constant 0 : index
    %c0_19 = arith.constant 0 : index
    %27 = vector.load %arg7[%c0_17, %c0_18, %c0_19] : memref<2x128x1xf32, #tpu.memory_space<vmem>>, vector<1x128x1xf32>
    %28 = vector.shape_cast %27 : vector<1x128x1xf32> to vector<128x1xf32>
    %29 = vector.broadcast %28 : vector<128x1xf32> to vector<128x128xf32>
    %30 = arith.addf %26, %29 : vector<128x128xf32>
    %31 = math.tanh %30 : vector<128x128xf32>
    %c1_20 = arith.constant 1 : index
    %c0_21 = arith.constant 0 : index
    %c0_22 = arith.constant 0 : index
    %32 = vector.load %arg6[%c1_20, %c0_21, %c0_22] : memref<2x128x128xf32, #tpu.memory_space<vmem>>, vector<1x128x128xf32>
    %33 = vector.shape_cast %32 : vector<1x128x128xf32> to vector<128x128xf32>
    %cst_23 = arith.constant dense<0.000000e+00> : vector<128x128xf32>
    %34 = tpu.matmul %33, %31, %cst_23 {dimension_numbers = #tpu.dot_dimension_numbers<[1], [0], [0], [1], [0, 0, 1, 1], [], []>} : vector<128x128xf32>, vector<128x128xf32>, vector<128x128xf32> -> vector<128x128xf32>
    %c1_24 = arith.constant 1 : index
    %c0_25 = arith.constant 0 : index
    %c0_26 = arith.constant 0 : index
    %35 = vector.load %arg7[%c1_24, %c0_25, %c0_26] : memref<2x128x1xf32, #tpu.memory_space<vmem>>, vector<1x128x1xf32>
    %36 = vector.shape_cast %35 : vector<1x128x1xf32> to vector<128x1xf32>
    %37 = vector.broadcast %36 : vector<128x1xf32> to vector<128x128xf32>
    %38 = arith.addf %34, %37 : vector<128x128xf32>
    %39 = math.tanh %38 : vector<128x128xf32>
    %c0_27 = arith.constant 0 : index
    %c0_28 = arith.constant 0 : index
    %40 = vector.load %arg8[%c0_27, %c0_28] : memref<128x1xf32, #tpu.memory_space<vmem>>, vector<128x1xf32>
    %41 = vector.broadcast %40 : vector<128x1xf32> to vector<128x128xf32>
    %42 = arith.mulf %39, %41 : vector<128x128xf32>
    %cst_29 = arith.constant dense<0.000000e+00> : vector<128xf32>
    %43 = vector.multi_reduction <add>, %42, %cst_29 [0] : vector<128x128xf32> to vector<128xf32>
    %44 = vector.shape_cast %43 : vector<128xf32> to vector<1x128xf32>
    %c0_30 = arith.constant 0 : index
    %c0_31 = arith.constant 0 : index
    %45 = memref.load %arg9[%c0_30, %c0_31] : memref<1x1xf32, #tpu.memory_space<smem>>
    %46 = vector.broadcast %45 : f32 to vector<1x128xf32>
    %47 = arith.addf %44, %46 : vector<1x128xf32>
    %c0_32 = arith.constant 0 : index
    %c0_33 = arith.constant 0 : index
    %c0_34 = arith.constant 0 : index
    %48 = vector.load %arg10[%c0_32, %c0_33, %c0_34] : memref<1x1x128xf32, #tpu.memory_space<vmem>>, vector<1x1x128xf32>
    %49 = vector.shape_cast %48 : vector<1x1x128xf32> to vector<1x128xf32>
    %50 = vector.shape_cast %47 : vector<1x128xf32> to vector<1x1x128xf32>
    tpu.vector_store %arg10[%c0_32, %c0_33, %c0_34], %50 {strides = array<i32>} : memref<1x1x128xf32, #tpu.memory_space<vmem>>, vector<1x1x128xf32>,
    return
  }
  func.func @transform_0(%arg0: i32) -> (i32, i32, i32) {
    %c0_i32 = arith.constant 0 : i32
    %c0_i32_0 = arith.constant 0 : i32
    %c0_i32_1 = arith.constant 0 : i32
    return %arg0, %c0_i32, %c0_i32_0 : i32, i32, i32
  }
  func.func @transform_1(%arg0: i32) -> (i32, i32, i32) {
    %c0_i32 = arith.constant 0 : i32
    %c0_i32_0 = arith.constant 0 : i32
    %c0_i32_1 = arith.constant 0 : i32
    return %arg0, %c0_i32, %c0_i32_0 : i32, i32, i32
  }
  func.func @transform_2(%arg0: i32) -> (i32, i32, i32) {
    %c0_i32 = arith.constant 0 : i32
    %c0_i32_0 = arith.constant 0 : i32
    %c0_i32_1 = arith.constant 0 : i32
    return %arg0, %c0_i32, %c0_i32_0 : i32, i32, i32
  }
  func.func @transform_3(%arg0: i32) -> (i32, i32) {
    %c0_i32 = arith.constant 0 : i32
    %c0_i32_0 = arith.constant 0 : i32
    %c0_i32_1 = arith.constant 0 : i32
    return %c0_i32, %c0_i32_0 : i32, i32
  }
  func.func @transform_4(%arg0: i32) -> (i32, i32) {
    %c0_i32 = arith.constant 0 : i32
    %c0_i32_0 = arith.constant 0 : i32
    %c0_i32_1 = arith.constant 0 : i32
    return %c0_i32, %c0_i32_0 : i32, i32
  }
  func.func @transform_5(%arg0: i32) -> (i32, i32, i32) {
    %c0_i32 = arith.constant 0 : i32
    %c0_i32_0 = arith.constant 0 : i32
    %c0_i32_1 = arith.constant 0 : i32
    %c0_i32_2 = arith.constant 0 : i32
    return %c0_i32, %c0_i32_0, %c0_i32_1 : i32, i32, i32
  }
  func.func @transform_6(%arg0: i32) -> (i32, i32, i32) {
    %c0_i32 = arith.constant 0 : i32
    %c0_i32_0 = arith.constant 0 : i32
    %c0_i32_1 = arith.constant 0 : i32
    %c0_i32_2 = arith.constant 0 : i32
    return %c0_i32, %c0_i32_0, %c0_i32_1 : i32, i32, i32
  }
  func.func @transform_7(%arg0: i32) -> (i32, i32) {
    %c0_i32 = arith.constant 0 : i32
    %c0_i32_0 = arith.constant 0 : i32
    %c0_i32_1 = arith.constant 0 : i32
    return %c0_i32, %c0_i32_0 : i32, i32
  }
  func.func @transform_8(%arg0: i32) -> (i32, i32) {
    %c0_i32 = arith.constant 0 : i32
    %c0_i32_0 = arith.constant 0 : i32
    %c0_i32_1 = arith.constant 0 : i32
    return %c0_i32, %c0_i32_0 : i32, i32
  }
  func.func @transform_9(%arg0: i32) -> (i32, i32, i32) {
    %c0_i32 = arith.constant 0 : i32
    %c0_i32_0 = arith.constant 0 : i32
    %c0_i32_1 = arith.constant 0 : i32
    return %arg0, %c0_i32, %c0_i32_0 : i32, i32, i32
  }
}

</mosaic_0001>

<bundles_post_ra>
// kernel: tpu_custom_call.1
= control target key start
LH: loop header
LB: loop body
LE: loop exit
PB: predicated region body
PF: predicated region fallthrough
CT: control target
= control target key end

     0   :  { %s2736_s0 = inlined_call_operand.vmem [shape: f32[2,1,128], index: 0, kind: input, shape index: {}]   ;;  %s2737_s1 = inlined_call_operand.vmem [shape: f32[2,1,128], index: 1, kind: input, shape index: {}]   ;;  %s2738_s2 = inlined_call_operand.vmem [shape: f32[2,1,128], index: 2, kind: input, shape index: {}]   ;;  %s2739_s3 = inlined_call_operand.vmem [shape: f32[128,3], index: 3, kind: input, shape index: {}]   ;;  %s2740_s4 = inlined_call_operand.vmem [shape: f32[128,1], index: 4, kind: input, shape index: {}]   ;;  %s2741_s5 = inlined_call_operand.vmem [shape: f32[2,128,128], index: 5, kind: input, shape index: {}]   ;;  %s2742_s6 = inlined_call_operand.vmem [shape: f32[2,128,1], index: 6, kind: input, shape index: {}]   ;;  %s2743_s7 = inlined_call_operand.vmem [shape: f32[128,1], index: 7, kind: input, shape index: {}]   ;;  %s2744_s8 = inlined_call_operand.<no memory space> [shape: f32[1,1], index: 8, kind: input, shape index: {}]   ;;  %s2745_s9 = inlined_call_operand.hbm [shape: f32[2,1,128], index: 9, kind: output, shape index: {}]  }
   0x1   :  { %14 = sst [smem:[#allocation2]] %s2744_s8 }
   0x2   :  { %15 = vsyncpa [#allocation4], 0 }
   0x3   :  { %17 = vsyncpa [#allocation4 + $0x1], 0  ;;  %s2142_s11 = smov 0   ;;  %s2144_s12 = smov 0  }
   0x4   :  { %s2146_s13 = smov 0   ;;  %s2148_s14 = smov 0  }
   0x5 LB: > { %s2163_s8 = sadd.s32 4294967295, %s2083_s14   ;;  %s1574_s15 = sadd.s32 4294967294, %s2083_s14   ;;  %s2083_s14 = sphi %s2148_s14, %s2751_s14   ;;  %s2079_s13 = sphi %s2146_s13, %s2750_s13   ;;  %s2075_s12 = sphi %s2144_s12, %s2749_s12   ;;  %s2071_s11 = sphi %s2142_s11, %s2748_s11  }
   0x6   : > { %s2167_s16 = sadd.s32 1, %s2083_s14   ;;  %s234_s17 = sadd.s32 1, %s2079_s13 }
   0x7   : > { %s231_s18 = ssub.s32 %s2083_s14, %s2167_s16  ;;  %p244_p0 = scmp.ne.s32.totalorder %s2079_s13, %s2075_s12 }
   0x8   : > { %p232_p1 = scmp.eq.s32.totalorder %s231_s18, 0  ;;  %p245_p2 = scmp.eq.s32.totalorder %s2163_s8, 1 }
   0x9   : > { %p250_p3 = scmp.ne.s32.totalorder %s2075_s12, %s2071_s11  ;;  %p251_p4 = scmp.eq.s32.totalorder %s1574_s15, 1 }
   0xa   : > { %s2178_s19 = scalar_select %p232_p1, %s2079_s13, %s234_s17  }
   0xb   : > { %p2180_p5 = por %p245_p2, %p244_p0  ;;  %p2184_p6 = por %p251_p4, %p250_p3 }
   0xc   : > { %p1577_p7 = scmp.ge.s32.totalorder %s2083_s14, 1  ;;  %p305_p8 = scmp.lt.s32.totalorder %s2083_s14, 3 }
   0xe   : > { %p306_p9 = pnand %p1577_p7, %p305_p8 }
   0xf   : > { %v356_v0 = vld [vmem:[%s2739_s3] sm:$0xff] (!%p306_p9)  ;;  %v2085_v1 = vmov (!%p306_p9), 2   ;;  %v2086_v2 = vmov (!%p306_p9), 1   ;;  %v358_v3 = vld [vmem:[%s2739_s3 + $0x10] sm:$0xff] (!%p306_p9)  ;;  %v357_v4 = vld [vmem:[%s2739_s3 + $0x8] sm:$0xff] (!%p306_p9)  ;;  %v2087_v7 = vmov (!%p306_p9), 0  }
  0x10   : > { %309 = sbr.rel (%p306_p9) target bundleno = 891 (0x37b), region = 56  ;;  %1899 = vset.pattern.permute.xlu0 (!%p306_p9), %v2085_v1  ;;  %1898 = vset.pattern.permute.xlu1 (!%p306_p9), %v2086_v2  ;;  %v361_v5 = vld [vmem:[%s2739_s3 + $0x28] sm:$0xff] (!%p306_p9)  ;;  %v360_v6 = vld [vmem:[%s2739_s3 + $0x20] sm:$0xff] (!%p306_p9)  ;;  %v363_v8 = vld [vmem:[%s2739_s3 + $0x38] sm:$0xff] (!%p306_p9)  ;;  %p344_p10 = scmp.lt.s32.totalorder (!%p306_p9), %s2163_s8, 1 }
  0x11   : > { %577 = vperm.xlu0 (!%p306_p9), %1899, %v356_v0   ;;  %475 = vperm.xlu1 (!%p306_p9), %1898, %v356_v0   ;;  %v2217_v9 = vld [vmem:[%s2739_s3 + $0x48] sm:$0xff] (!%p306_p9)  ;;  %v359_v10 = vld [vmem:[%s2739_s3 + $0x18] sm:$0xff] (!%p306_p9)  ;;  %v678_v14 = vld [vmem:[%s2740_s4] sm:$0xff] (!%p306_p9)  ;;  %s1487_s22 = sld [smem:[#allocation2]] (!%p306_p9)  ;;  %s342_s24 = sand.u32 (!%p306_p9), 1, %s2075_s12  }
  0x12   : > { %v2226_v11 = vld [vmem:[%s2739_s3 + $0x58] sm:$0xff] (!%p306_p9)  ;;  %v2232_v12 = vld [vmem:[%s2739_s3 + $0x68] sm:$0xff] (!%p306_p9)  ;;  %v362_v16 = vld [vmem:[%s2739_s3 + $0x30] sm:$0xff] (!%p306_p9)  ;;  %s343_s25 = scalar_lea.vmem (!%p306_p9), [#allocation3], %s342_s24  ;;  %s1492_s30 = scalar_lea.sflag (!%p306_p9), [#allocation4], %s342_s24 }
  0x13   : > { %v2239_v13 = vld [vmem:[%s2739_s3 + $0x78] sm:$0xff] (!%p306_p9)  ;;  %v679_v15 = vld [vmem:[%s2740_s4 + $0x8] sm:$0xff] (!%p306_p9)  ;;  %v680_v17 = vld [vmem:[%s2740_s4 + $0x10] sm:$0xff] (!%p306_p9)  ;;  %s1504_s26 = sshll.u32 (!%p306_p9), %s343_s25, 4  ;;  %s2696_s26 = int_to_ptr.vmem [resolvable:$true] %s1504_s26 }
  0x14   : > { %v682_v18 = vld [vmem:[%s2740_s4 + $0x20] sm:$0xff] (!%p306_p9)  ;;  %v681_v19 = vld [vmem:[%s2740_s4 + $0x18] sm:$0xff] (!%p306_p9)  ;;  %v684_v20 = vld [vmem:[%s2740_s4 + $0x30] sm:$0xff] (!%p306_p9) }
  0x15   : > { %585 = vperm.xlu0 (!%p306_p9), %1899, %v358_v3   ;;  %479 = vperm.xlu1 (!%p306_p9), %1898, %v357_v4   ;;  %v686_v21 = vld [vmem:[%s2740_s4 + $0x40] sm:$0xff] (!%p306_p9)  ;;  %v688_v22 = vld [vmem:[%s2740_s4 + $0x50] sm:$0xff] (!%p306_p9)  ;;  %v683_v23 = vld [vmem:[%s2740_s4 + $0x28] sm:$0xff] (!%p306_p9) }
  0x16   : > { %v364_v24 = vld [vmem:[%s2739_s3 + $0x40] sm:$0xff] (!%p306_p9)  ;;  %v693_v26 = vld [vmem:[%s2740_s4 + $0x78] sm:$0xff] (!%p306_p9)  ;;  %v823_v27 = vld [vmem:[%s2742_s6 + $0x8] sm:$0xff] (!%p306_p9) }
  0x17   : > { %v690_v25 = vld [vmem:[%s2740_s4 + $0x60] sm:$0xff]  ;;  %v825_v28 = vld [vmem:[%s2742_s6 + $0x18] sm:$0xff]  ;;  %v827_v29 = vld [vmem:[%s2742_s6 + $0x28] sm:$0xff]  ;;  %s345_s23 = scalar_select %p344_p10, %s2163_s8, 1 }
  0x18   : > { %v685_v30 = vld [vmem:[%s2740_s4 + $0x38] sm:$0xff]  ;;  %v366_v32 = vld [vmem:[%s2739_s3 + $0x50] sm:$0xff]  ;;  %v831_v33 = vld [vmem:[%s2742_s6 + $0x48] sm:$0xff] }
  0x19   : > { %597 = vperm.xlu0 %1899, %v361_v5   ;;  %1900 = vset.pattern.permute.xlu1 %v2085_v1  ;;  %v829_v31 = vld [vmem:[%s2742_s6 + $0x38] sm:$0xff]  ;;  %v835_v35 = vld [vmem:[%s2742_s6 + $0x68] sm:$0xff]  ;;  %v368_v41 = vld [vmem:[%s2739_s3 + $0x60] sm:$0xff]  ;;  %s349_s28 = scalar_lea.vmem %s2737_s1, %s345_s23  ;;  %s346_s10 = scalar_lea.vmem %s2736_s0, %s345_s23 }
  0x1a   : > { %581 = vperm.xlu1 %1900, %v357_v4   ;;  %v833_v34 = vld [vmem:[%s2742_s6 + $0x58] sm:$0xff]  ;;  %v687_v37 = vld [vmem:[%s2740_s4 + $0x48] sm:$0xff]  ;;  %v1356_v54 = vld [vmem:[%s2743_s7 + $0x10] sm:$0xff]  ;;  %s352_s18 = scalar_lea.vmem %s2738_s2, %s345_s23  ;;  %s1613_s23 = sshll.u32 %s2163_s8, 4 }
  0x1b   : > { %v837_v36 = vld [vmem:[%s2742_s6 + $0x78] sm:$0xff]  ;;  %v1598_v40 = vld [vmem:[%s2742_s6 + $0x88] sm:$0xff]  ;;  %v370_v60 = vld [vmem:[%s2739_s3 + $0x70] sm:$0xff]  ;;  %s2694_s29 = scalar_lea.hbm %s2745_s9, %s1613_s23  ;;  %s2088_s8 = smov [#allocation3]  }
  0x1c   : > { %v1600_v44 = vld [vmem:[%s2742_s6 + $0x98] sm:$0xff]  ;;  %v1602_v46 = vld [vmem:[%s2742_s6 + $0xa8] sm:$0xff]  ;;  %v1358_v62 = vld [vmem:[%s2743_s7 + $0x20] sm:$0xff]  ;;  %s2025_s15 = sshll.u32 %s2088_s8, 4  ;;  %s2026_s15 = int_to_ptr.vmem [resolvable:$false] %s2025_s15 }
  0x1d   : > { %1907 = vset.pattern.permute.xlu0 %v2086_v2  ;;  %v1604_v48 = vld [vmem:[%s2742_s6 + $0xb8] sm:$0xff]  ;;  %v1355_v51 = vld [vmem:[%s2743_s7 + $0x8] sm:$0xff]  ;;  %s2027_s17 = scalar_lea.vmem %s2026_s15, 32  ;;  %p2028_p0 = scmp.lt.s32.totalorder %s2696_s26, %s2026_s15 }
  0x1e   : > { %491 = vperm.xlu0 %1907, %v360_v6   ;;  %1901 = vset.pattern.permute.xlu1 %v2087_v7  ;;  %v689_v56 = vld [vmem:[%s2740_s4 + $0x58] sm:$0xff] }
  0x1f   : > { %384 = vperm.xlu1 %1901, %v358_v3   ;;  %v1357_v58 = vld [vmem:[%s2743_s7 + $0x18] sm:$0xff] }
  0x22   : > { %503 = vperm.xlu0 %1907, %v363_v8  }
  0x23   : > { %1902 = vset.pattern.permute.xlu1 %v2086_v2 }
  0x24   : > { %483 = vperm.xlu1 %1902, %v358_v3  }
  0x26   : > { %511 = vperm.xlu0 %1907, %v2217_v9  }
  0x28   : > { %487 = vperm.xlu1 %1902, %v359_v10  }
  0x2a   : > { %519 = vperm.xlu0 %1907, %v2226_v11  }
  0x2c   : > { %1903 = vset.pattern.permute.xlu1 %v2085_v1 }
  0x2d   : > { %589 = vperm.xlu1 %1903, %v359_v10  }
  0x2e   : > { %527 = vperm.xlu0 %1907, %v2232_v12  }
  0x31   : > { %1904 = vset.pattern.permute.xlu1 %v2087_v7 }
  0x32   : > { %535 = vperm.xlu0 %1907, %v2239_v13   ;;  %696 = vperm.xlu1 %1904, %v678_v14  }
  0x36   : > { %1922 = vset.pattern.permute.xlu0 %v2087_v7  ;;  %394 = vperm.xlu1 %1904, %v360_v6  }
  0x37   : > { %374 = vperm.xlu0 %1922, %v356_v0   ;;  %v1359_v0 = vld [vmem:[%s2743_s7 + $0x28] sm:$0xff] }
  0x3a   : > { %399 = vperm.xlu1 %1904, %v361_v5  }
  0x3b   : > { %379 = vperm.xlu0 %1922, %v357_v4  }
  0x3e   : > { %1905 = vset.pattern.permute.xlu1 %v2086_v2 }
  0x3f   : > { %389 = vperm.xlu0 %1922, %v359_v10   ;;  %495 = vperm.xlu1 %1905, %v361_v5   ;;  %v2411_v5 = vld [vmem:[%s349_s28] ss:$0 sm:$0xff] }
  0x43   : > { %701 = vperm.xlu0 %1922, %v679_v15   ;;  %1906 = vset.pattern.permute.xlu1 %v2085_v1  ;;  %v1361_v15 = vld [vmem:[%s2743_s7 + $0x38] sm:$0xff] }
  0x44   : > { %593 = vperm.xlu1 %1906, %v360_v6   ;;  %v1360_v6 = vld [vmem:[%s2743_s7 + $0x30] sm:$0xff] }
  0x47   : > { %404 = vperm.xlu0 %1922, %v362_v16  }
  0x48   : > { %1908 = vset.pattern.permute.xlu1 %v2087_v7 }
  0x49   : > { %706 = vperm.xlu1 %1908, %v680_v17  }
  0x4b   : > { %716 = vperm.xlu0 %1922, %v682_v18  }
  0x4d   : > { %711 = vperm.xlu1 %1908, %v681_v19  }
  0x4f   : > { %419 = vperm.xlu0 %1922, %v2217_v9  }
  0x51   : > { %409 = vperm.xlu1 %1908, %v363_v8  }
  0x53   : > { %726 = vperm.xlu0 %1922, %v684_v20  }
  0x55   : > { %1909 = vset.pattern.permute.xlu1 %v2086_v2 }
  0x56   : > { %499 = vperm.xlu1 %1909, %v362_v16  }
  0x57   : > { %429 = vperm.xlu0 %1922, %v2226_v11  }
  0x5a   : > { %1910 = vset.pattern.permute.xlu1 %v2085_v1 }
  0x5b   : > { %736 = vperm.xlu0 %1922, %v686_v21   ;;  %601 = vperm.xlu1 %1910, %v362_v16   ;;  %v1362_v21 = vld [vmem:[%s2743_s7 + $0x40] sm:$0xff] }
  0x5f   : > { %439 = vperm.xlu0 %1922, %v2232_v12   ;;  %605 = vperm.xlu1 %1910, %v363_v8   ;;  %v2421_v8 = vld [vmem:[%s346_s10] ss:$0 sm:$0xff]  ;;  %s2021_s10 = scalar_lea.vmem %s2696_s26, 16 }
  0x60   : > { %p2022_p11 = scmp.ne.s32.totalorder %s2696_s26, %s2021_s10  ;;  %p2029_p1 = scmp.lt.s32.totalorder %s2027_s17, %s2021_s10 }
  0x62   : > { %p2023_p12 = pnand %p2022_p11, %p2180_p5  ;;  %p2030_p2 = por %p2029_p1, %p2028_p0 }
  0x63   : > { %746 = vperm.xlu0 %1922, %v688_v22   ;;  %1911 = vset.pattern.permute.xlu1 %v2087_v7 }
  0x64   : > { %721 = vperm.xlu1 %1911, %v683_v23   ;;  %v691_v23 = vld [vmem:[%s2740_s4 + $0x68] sm:$0xff]  ;;  %p2024_p13 = pneg %p2023_p12 }
  0x66   : > { %p2031_p3 = pnand %p2030_p2, %p2024_p13 }
  0x67   : > { %449 = vperm.xlu0 %1922, %v2239_v13  }
  0x68   : > { %414 = vperm.xlu1 %1911, %v364_v24  }
  0x6b   : > { %756 = vperm.xlu0 %1922, %v690_v25  }
  0x6c   : > { %1912 = vset.pattern.permute.xlu1 %v2086_v2 }
  0x6d   : > { %507 = vperm.xlu1 %1912, %v364_v24  }
  0x6f   : > { %771 = vperm.xlu0 %1922, %v693_v26  }
  0x71   : > { %1913 = vset.pattern.permute.xlu1 %v2085_v1 }
  0x72   : > { %609 = vperm.xlu1 %1913, %v364_v24  }
  0x73   : > { %845 = vperm.xlu0 %1922, %v823_v27  }
  0x76   : > { %613 = vperm.xlu1 %1913, %v2217_v9  }
  0x77   : > { %855 = vperm.xlu0 %1922, %v825_v28   ;;  %v1363_v28 = vld [vmem:[%s2743_s7 + $0x48] sm:$0xff] }
  0x7a   : > { %1914 = vset.pattern.permute.xlu1 %v2087_v7 }
  0x7b   : > { %865 = vperm.xlu0 %1922, %v827_v29   ;;  %731 = vperm.xlu1 %1914, %v685_v30   ;;  %v692_v30 = vld [vmem:[%s2740_s4 + $0x70] sm:$0xff] }
  0x7f   : > { %875 = vperm.xlu0 %1922, %v829_v31   ;;  %424 = vperm.xlu1 %1914, %v366_v32  }
  0x83   : > { %885 = vperm.xlu0 %1922, %v831_v33   ;;  %1915 = vset.pattern.permute.xlu1 %v2086_v2 }
  0x84   : > { %515 = vperm.xlu1 %1915, %v366_v32  }
  0x87   : > { %895 = vperm.xlu0 %1922, %v833_v34  }
  0x88   : > { %1916 = vset.pattern.permute.xlu1 %v2085_v1 }
  0x89   : > { %617 = vperm.xlu1 %1916, %v366_v32  }
  0x8b   : > { %905 = vperm.xlu0 %1922, %v835_v35  }
  0x8d   : > { %621 = vperm.xlu1 %1916, %v2226_v11   ;;  %v2425_v11 = vld [vmem:[%s352_s18] ss:$0 sm:$0xff] }
  0x8f   : > { %915 = vperm.xlu0 %1922, %v837_v36  }
  0x90   : > { %v476_v38 = vpop.permute.xlu1 %475  ;;  %v2333_v39 = vpop.permute.xlu0 %577 }
  0x91   : > { %1917 = vset.pattern.permute.xlu1 %v2087_v7  ;;  %v544_v10 = vmul.f32 %v2411_v5, %v476_v38  ;;  %v646_v14 = vmul.f32 %v2425_v11, %v2333_v39  ;;  %v822_v39 = vld [vmem:[%s2742_s6] sm:$0xff] }
  0x92   : > { %741 = vperm.xlu1 %1917, %v687_v37   ;;  %v1365_v37 = vld [vmem:[%s2743_s7 + $0x58] sm:$0xff] }
  0x93   : > { %1120 = vperm.xlu0 %1922, %v1598_v40  }
  0x94   : > { %v2342_v42 = vpop.permute.xlu1 %479  ;;  %v2344_v43 = vpop.permute.xlu0 %585 }
  0x95   : > { %v648_v35 = vmul.f32 %v2425_v11, %v2344_v43  ;;  %v1367_v43 = vld [vmem:[%s2743_s7 + $0x68] sm:$0xff] }
  0x96   : > { %434 = vperm.xlu1 %1917, %v368_v41  }
  0x97   : > { %1130 = vperm.xlu0 %1922, %v1600_v44  }
  0x98   : > { %v2349_v45 = vpop.permute.xlu0 %597 }
  0x99   : > { %v2354_v47 = vpop.permute.xlu1 %581 }
  0x9a   : > { %1918 = vset.pattern.permute.xlu1 %v2086_v2  ;;  %v647_v26 = vmul.f32 %v2425_v11, %v2354_v47 }
  0x9b   : > { %1140 = vperm.xlu0 %1922, %v1602_v46   ;;  %523 = vperm.xlu1 %1918, %v368_v41   ;;  %v824_v46 = vld [vmem:[%s2742_s6 + $0x10] sm:$0xff] }
  0x9d   : > { %v2360_v49 = vpop.permute.xlu0 %491 }
  0x9e   : > { %v2362_v50 = vpop.permute.xlu1 %384 }
  0x9f   : > { %1150 = vperm.xlu0 %1922, %v1604_v48   ;;  %1919 = vset.pattern.permute.xlu1 %v2085_v1  ;;  %v460_v31 = vmul.f32 %v2421_v8, %v2362_v50 }
  0xa0   : > { %625 = vperm.xlu1 %1919, %v368_v41  }
  0xa1   : > { %v2368_v52 = vpop.permute.xlu0 %503 }
  0xa3   : > { %1377 = vperm.xlu0 %1922, %v1355_v51   ;;  %v484_v53 = vpop.permute.xlu1 %483  ;;  %v1369_v51 = vld [vmem:[%s2743_s7 + $0x78] sm:$0xff] }
  0xa4   : > { %629 = vperm.xlu1 %1919, %v2232_v12  }
  0xa5   : > { %v2374_v55 = vpop.permute.xlu0 %511 }
  0xa7   : > { %1382 = vperm.xlu0 %1922, %v1356_v54   ;;  %v2379_v57 = vpop.permute.xlu1 %487  ;;  %v826_v54 = vld [vmem:[%s2742_s6 + $0x20] sm:$0xff] }
  0xa8   : > { %1920 = vset.pattern.permute.xlu1 %v2087_v7  ;;  %v547_v38 = vmul.f32 %v2411_v5, %v2379_v57 }
  0xa9   : > { %751 = vperm.xlu1 %1920, %v689_v56   ;;  %v2386_v59 = vpop.permute.xlu0 %519 }
  0xab   : > { %1387 = vperm.xlu0 %1922, %v1357_v58  }
  0xac   : > { %v2391_v61 = vpop.permute.xlu1 %589 }
  0xad   : > { %444 = vperm.xlu1 %1920, %v370_v60   ;;  %v2397_v63 = vpop.permute.xlu0 %527  ;;  %v649_v44 = vmul.f32 %v2425_v11, %v2391_v61  ;;  %v828_v61 = vld [vmem:[%s2742_s6 + $0x30] sm:$0xff] }
  0xaf   : > { %1392 = vperm.xlu0 %1922, %v1358_v62   ;;  %v806_v62 = vld [vmem:[%s2741_s5] sm:$0xff] }
  0xb0   : > { %1712 = vmatprep.mubr.f32.mxu0 %v806_v62 }
  0xb1   : > { %1921 = vset.pattern.permute.xlu1 %v2086_v2  ;;  %v697_v3 = vpop.permute.xlu1 %696  ;;  %v2406_v4 = vpop.permute.xlu0 %535 }
  0xb2   : > { %531 = vperm.xlu1 %1921, %v370_v60  }
  0xb3   : > { %1397 = vperm.xlu0 %1922, %v1359_v0  }
  0xb5   : > { %v2419_v2 = vpop.permute.xlu1 %394 }
  0xb6   : > { %v375_v9 = vpop.permute.xlu0 %374  ;;  %1923 = vset.pattern.permute.xlu1 %v2085_v1  ;;  %v545_v1 = vmul.f32 %v2411_v5, %v2342_v42 }
  0xb7   : > { %v458_v12 = vmul.f32 %v2421_v8, %v375_v9  ;;  %1402 = vperm.xlu0 %1922, %v1360_v6   ;;  %633 = vperm.xlu1 %1923, %v370_v60  }
  0xb9   : > { %v560_v16 = vadd.f32 %v544_v10, %v458_v12  ;;  %v2433_v17 = vpop.permute.xlu1 %399  ;;  %v548_v12 = vmul.f32 %v2411_v5, %v2360_v49 }
  0xba   : > { %v380_v18 = vpop.permute.xlu0 %379 }
  0xbb   : > { %v459_v19 = vmul.f32 %v2421_v8, %v380_v18  ;;  %1407 = vperm.xlu0 %1922, %v1361_v15   ;;  %637 = vperm.xlu1 %1923, %v2239_v13   ;;  %v662_v20 = vadd.f32 %v646_v14, %v560_v16  ;;  %v546_v13 = vmul.f32 %v2411_v5, %v484_v53  ;;  %v832_v15 = vld [vmem:[%s2742_s6 + $0x50] sm:$0xff] }
  0xbc   : > { %v462_v14 = vmul.f32 %v2421_v8, %v2419_v2  ;;  %v834_v2 = vld [vmem:[%s2742_s6 + $0x60] sm:$0xff] }
  0xbd   : > { %v561_v22 = vadd.f32 %v545_v1, %v459_v19  ;;  %v774_v27 = vadd.f32 %v697_v3, %v662_v20  ;;  %v562_v36 = vadd.f32 %v546_v13, %v460_v31  ;;  %v830_v3 = vld [vmem:[%s2742_s6 + $0x40] sm:$0xff]  ;;  %v463_v20 = vmul.f32 %v2421_v8, %v2433_v17  ;;  %v836_v17 = vld [vmem:[%s2742_s6 + $0x70] sm:$0xff] }
  0xbe   : > { %v390_v24 = vpop.permute.xlu0 %389  ;;  %v2445_v25 = vpop.permute.xlu1 %495  ;;  %v564_v49 = vadd.f32 %v548_v12, %v462_v14  ;;  %v553_v14 = vmul.f32 %v2411_v5, %v2374_v55  ;;  %v1610_v55 = vld [vmem:[%s2742_s6 + $0xe8] sm:$0xff] }
  0xbf   : > { %1412 = vperm.xlu0 %1922, %v1362_v21   ;;  %1924 = vset.pattern.permute.xlu1 %v2087_v7  ;;  %v663_v29 = vadd.f32 %v647_v26, %v561_v22  ;;  %v461_v33 = vmul.f32 %v2421_v8, %v390_v24  ;;  %1925 = vtanh.f32 %v774_v27  ;;  %v664_v42 = vadd.f32 %v648_v35, %v562_v36 }
  0xc0   : > { %761 = vperm.xlu1 %1924, %v691_v23   ;;  %v549_v16 = vmul.f32 %v2411_v5, %v2445_v25  ;;  %v651_v21 = vmul.f32 %v2425_v11, %v2349_v45 }
  0xc1   : > { %v563_v40 = vadd.f32 %v547_v38, %v461_v33 }
  0xc2   : > { %v702_v32 = vpop.permute.xlu0 %701  ;;  %v565_v22 = vadd.f32 %v549_v16, %v463_v20  ;;  %v1609_v20 = vld [vmem:[%s2742_s6 + $0xe0] sm:$0xff] }
  0xc3   : > { %v775_v7 = vadd.f32 %v702_v32, %v663_v29  ;;  %1417 = vperm.xlu0 %1922, %v1363_v28   ;;  %v594_v34 = vpop.permute.xlu1 %593  ;;  %v665_v48 = vadd.f32 %v649_v44, %v563_v40  ;;  %v1597_v29 = vld [vmem:[%s2742_s6 + $0x80] sm:$0xff]  ;;  %v1603_v40 = vld [vmem:[%s2742_s6 + $0xb0] sm:$0xff] }
  0xc4   : > { %766 = vperm.xlu1 %1924, %v692_v30   ;;  %v650_v19 = vmul.f32 %v2425_v11, %v594_v34  ;;  %v667_v13 = vadd.f32 %v651_v21, %v565_v22  ;;  %v1599_v30 = vld [vmem:[%s2742_s6 + $0x90] sm:$0xff]  ;;  %v1601_v32 = vld [vmem:[%s2742_s6 + $0xa0] sm:$0xff] }
  0xc5   : > { %1927 = vtanh.f32 %v775_v7 }
  0xc6   : > { %v405_v9 = vpop.permute.xlu0 %404  ;;  %v666_v25 = vadd.f32 %v650_v19, %v564_v49 }
  0xc7   : > { %1427 = vperm.xlu0 %1922, %v1365_v37   ;;  %v464_v33 = vmul.f32 %v2421_v8, %v405_v9 }
  0xc8   : > { %840 = vperm.xlu1 %1924, %v822_v39   ;;  %v707_v41 = vpop.permute.xlu1 %706 }
  0xc9   : > { %v776_v47 = vadd.f32 %v707_v41, %v664_v42  ;;  %v1926_v56 = vpop.eup %1925  ;;  %v551_v42 = vmul.f32 %v2411_v5, %v2368_v52  ;;  %v1605_v52 = vld [vmem:[%s2742_s6 + $0xc0] sm:$0xff] }
  0xca   : > { %v717_v23 = vpop.permute.xlu0 %716 }
  0xcb   : > { %1437 = vperm.xlu0 %1922, %v1367_v43   ;;  %1929 = vtanh.f32 %v776_v47  ;;  %v778_v26 = vadd.f32 %v717_v23, %v666_v25 }
  0xcc   : > { %850 = vperm.xlu1 %1924, %v824_v46   ;;  %v712_v50 = vpop.permute.xlu1 %711 }
  0xcd   : > { %v777_v53 = vadd.f32 %v712_v50, %v665_v48  ;;  %v1354_v48 = vld [vmem:[%s2743_s7] sm:$0xff] }
  0xce   : > { %v420_v37 = vpop.permute.xlu0 %419 }
  0xcf   : > { %v1928_v57 = vpop.eup %1927  ;;  %1931 = vtanh.f32 %v777_v53  ;;  %1447 = vperm.xlu0 %1922, %v1369_v51  }
  0xd0   : > { %860 = vperm.xlu1 %1924, %v826_v54   ;;  %v410_v58 = vpop.permute.xlu1 %409  ;;  %v1792_v60 = vpack.c.bf16 %v1928_v57, %v1926_v56  ;;  %1933 = vtanh.f32 %v778_v26 }
  0xd1   : > { %v465_v43 = vmul.f32 %v2421_v8, %v410_v58  ;;  %v1606_v58 = vld [vmem:[%s2742_s6 + $0xc8] sm:$0xff] }
  0xd2   : > { %1793 = vmatprep.subr.bf16.mxu0 %v1792_v60  ;;  %v727_v51 = vpop.permute.xlu0 %726 }
  0xd3   : > { %1795 = vmatpush3.bf16.msra.mxu0 %v1792_v60  ;;  %v567_v50 = vadd.f32 %v551_v42, %v465_v43 }
  0xd4   : > { %870 = vperm.xlu1 %1924, %v828_v61   ;;  %v1607_v61 = vld [vmem:[%s2742_s6 + $0xd0] sm:$0xff] }
  0xd5   : > { %v500_v0 = vpop.permute.xlu1 %499  ;;  %v1930_v6 = vpop.eup %1929 }
  0xd6   : > { %v550_v7 = vmul.f32 %v2411_v5, %v500_v0  ;;  %v430_v16 = vpop.permute.xlu0 %429 }
  0xd8   : > { %880 = vperm.xlu1 %1924, %v830_v3   ;;  %v566_v41 = vadd.f32 %v550_v7, %v464_v33  ;;  %v1608_v3 = vld [vmem:[%s2742_s6 + $0xd8] sm:$0xff] }
  0xd9   : > { %v1932_v10 = vpop.eup %1931 }
  0xda   : > { %v602_v18 = vpop.permute.xlu1 %601  ;;  %v1796_v1 = vpack.c.bf16 %v1932_v10, %v1930_v6  ;;  %v1934_v34 = vpop.eup %1933 }
  0xdb   : > { %v652_v36 = vmul.f32 %v2425_v11, %v602_v18  ;;  %v737_v23 = vpop.permute.xlu0 %736 }
  0xdc   : > { %890 = vperm.xlu1 %1924, %v832_v15   ;;  %1797 = vmatprep.subr.bf16.mxu0 %v1796_v1  ;;  %v467_v15 = vmul.f32 %v2421_v8, %v420_v37 }
  0xdd   : > { %1799 = vmatpush3.bf16.msra.mxu0 %v1796_v1  ;;  %v668_v44 = vadd.f32 %v652_v36, %v566_v41  ;;  %v1368_v41 = vld [vmem:[%s2743_s7 + $0x70] sm:$0xff] }
  0xde   : > { %v606_v24 = vpop.permute.xlu1 %605 }
  0xdf   : > { %v653_v46 = vmul.f32 %v2425_v11, %v606_v24  ;;  %v780_v53 = vadd.f32 %v727_v51, %v668_v44 }
  0xe0   : > { %900 = vperm.xlu1 %1924, %v834_v2   ;;  %v569_v2 = vadd.f32 %v553_v14, %v467_v15 }
  0xe1   : > { %v669_v54 = vadd.f32 %v653_v46, %v567_v50 }
  0xe3   : > { %v722_v27 = vpop.permute.xlu1 %721 }
  0xe4   : > { %v779_v28 = vadd.f32 %v722_v27, %v667_v13  ;;  %910 = vperm.xlu1 %1924, %v836_v17   ;;  %v1611_v17 = vld [vmem:[%s2742_s6 + $0xf0] sm:$0xff] }
  0xe6   : > { %1935 = vtanh.f32 %v779_v28  ;;  %v1612_v28 = vld [vmem:[%s2742_s6 + $0xf8] sm:$0xff] }
  0xe7   : > { %v415_v45 = vpop.permute.xlu1 %414  ;;  %1937 = vtanh.f32 %v780_v53 }
  0xe8   : > { %1115 = vperm.xlu1 %1924, %v1597_v29   ;;  %v466_v10 = vmul.f32 %v2421_v8, %v415_v45  ;;  %v1364_v29 = vld [vmem:[%s2743_s7 + $0x50] sm:$0xff] }
  0xec   : > { %1125 = vperm.xlu1 %1924, %v1599_v30   ;;  %v508_v31 = vpop.permute.xlu1 %507 }
  0xed   : > { %v552_v0 = vmul.f32 %v2411_v5, %v508_v31 }
  0xef   : > { %v568_v19 = vadd.f32 %v552_v0, %v466_v10  ;;  %v557_v10 = vmul.f32 %v2411_v5, %v2397_v63 }
  0xf0   : > { %v1936_v35 = vpop.eup %1935  ;;  %1135 = vperm.xlu1 %1924, %v1601_v32   ;;  %v1366_v32 = vld [vmem:[%s2743_s7 + $0x60] sm:$0xff] }
  0xf1   : > { %v610_v38 = vpop.permute.xlu1 %609  ;;  %v1800_v39 = vpack.c.bf16 %v1936_v35, %v1934_v34  ;;  %v1938_v6 = vpop.eup %1937 }
  0xf2   : > { %v654_v12 = vmul.f32 %v2425_v11, %v610_v38  ;;  %v440_v35 = vpop.permute.xlu0 %439 }
  0xf3   : > { %1801 = vmatprep.subr.bf16.mxu0 %v1800_v39 }
  0xf4   : > { %1145 = vperm.xlu1 %1924, %v1603_v40   ;;  %1803 = vmatpush3.bf16.msra.mxu0 %v1800_v39  ;;  %v670_v49 = vadd.f32 %v654_v12, %v568_v19  ;;  %v555_v39 = vmul.f32 %v2411_v5, %v2386_v59  ;;  %v469_v40 = vmul.f32 %v2421_v8, %v430_v16 }
  0xf5   : > { %v614_v47 = vpop.permute.xlu1 %613  ;;  %v471_v12 = vmul.f32 %v2421_v8, %v440_v35  ;;  %v813_v35 = vld [vmem:[%s2741_s5 + $0x38] sm:$0xff] }
  0xf6   : > { %v655_v21 = vmul.f32 %v2425_v11, %v614_v47  ;;  %v782_v24 = vadd.f32 %v737_v23, %v670_v49  ;;  %v571_v46 = vadd.f32 %v555_v39, %v469_v40  ;;  %v747_v47 = vpop.permute.xlu0 %746  ;;  %v817_v39 = vld [vmem:[%s2741_s5 + $0x58] sm:$0xff]  ;;  %v818_v40 = vld [vmem:[%s2741_s5 + $0x60] sm:$0xff] }
  0xf8   : > { %1372 = vperm.xlu1 %1924, %v1354_v48   ;;  %v671_v25 = vadd.f32 %v655_v21, %v569_v2 }
  0xfa   : > { %v732_v56 = vpop.permute.xlu1 %731 }
  0xfb   : > { %v781_v57 = vadd.f32 %v732_v56, %v669_v54 }
  0xfc   : > { %1155 = vperm.xlu1 %1924, %v1605_v52  }
  0xfd   : > { %1939 = vtanh.f32 %v781_v57  ;;  %v450_v57 = vpop.permute.xlu0 %449 }
  0xfe   : > { %v425_v60 = vpop.permute.xlu1 %424  ;;  %1941 = vtanh.f32 %v782_v24 }
  0xff   : > { %v468_v7 = vmul.f32 %v2421_v8, %v425_v60 }
 0x100   : > { %1160 = vperm.xlu1 %1924, %v1606_v58  }
 0x101   : > { %v757_v15 = vpop.permute.xlu0 %756 }
 0x103   : > { %v516_v62 = vpop.permute.xlu1 %515 }
 0x104   : > { %1165 = vperm.xlu1 %1924, %v1607_v61   ;;  %v554_v30 = vmul.f32 %v2411_v5, %v516_v62 }
 0x105   : > { %v772_v23 = vpop.permute.xlu0 %771 }
 0x106   : > { %v570_v38 = vadd.f32 %v554_v30, %v468_v7  ;;  %v807_v30 = vld [vmem:[%s2741_s5 + $0x8] sm:$0xff] }
 0x107   : > { %v1940_v9 = vpop.eup %1939  ;;  %v811_v7 = vld [vmem:[%s2741_s5 + $0x28] sm:$0xff] }
 0x108   : > { %1170 = vperm.xlu1 %1924, %v1608_v3   ;;  %v618_v18 = vpop.permute.xlu1 %617  ;;  %v1804_v1 = vpack.c.bf16 %v1940_v9, %v1938_v6  ;;  %v1942_v31 = vpop.eup %1941  ;;  %v559_v3 = vmul.f32 %v2411_v5, %v2406_v4  ;;  %v473_v6 = vmul.f32 %v2421_v8, %v450_v57 }
 0x109   : > { %v656_v34 = vmul.f32 %v2425_v11, %v618_v18 }
 0x10a   : > { %1805 = vmatprep.subr.bf16.mxu0 %v1804_v1 }
 0x10b   : > { %1807 = vmatpush3.bf16.msra.mxu0 %v1804_v1  ;;  %v672_v42 = vadd.f32 %v656_v34, %v570_v38  ;;  %v575_v1 = vadd.f32 %v559_v3, %v473_v6  ;;  %v812_v34 = vld [vmem:[%s2741_s5 + $0x30] sm:$0xff] }
 0x10c   : > { %1175 = vperm.xlu1 %1924, %v1609_v20   ;;  %v622_v22 = vpop.permute.xlu1 %621  ;;  %v573_v20 = vadd.f32 %v557_v10, %v471_v12  ;;  %v816_v38 = vld [vmem:[%s2741_s5 + $0x50] sm:$0xff] }
 0x10d   : > { %v657_v43 = vmul.f32 %v2425_v11, %v622_v22  ;;  %v784_v48 = vadd.f32 %v747_v47, %v672_v42  ;;  %v820_v42 = vld [vmem:[%s2741_s5 + $0x70] sm:$0xff] }
 0x10f   : > { %v673_v50 = vadd.f32 %v657_v43, %v571_v46  ;;  %v821_v43 = vld [vmem:[%s2741_s5 + $0x78] sm:$0xff]  ;;  %v846_v46 = vpop.permute.xlu0 %845 }
 0x110   : > { %1180 = vperm.xlu1 %1924, %v1610_v55  }
 0x111   : > { %v742_v26 = vpop.permute.xlu1 %741 }
 0x112   : > { %v783_v13 = vadd.f32 %v742_v26, %v671_v25 }
 0x114   : > { %1943 = vtanh.f32 %v783_v13  ;;  %1185 = vperm.xlu1 %1924, %v1611_v17  }
 0x115   : > { %v435_v27 = vpop.permute.xlu1 %434  ;;  %1945 = vtanh.f32 %v784_v48  ;;  %v856_v48 = vpop.permute.xlu0 %855 }
 0x116   : > { %v470_v60 = vmul.f32 %v2421_v8, %v435_v27 }
 0x118   : > { %1190 = vperm.xlu1 %1924, %v1612_v28  }
 0x11a   : > { %v524_v45 = vpop.permute.xlu1 %523 }
 0x11b   : > { %v556_v52 = vmul.f32 %v2411_v5, %v524_v45 }
 0x11c   : > { %1422 = vperm.xlu1 %1924, %v1364_v29  }
 0x11d   : > { %v572_v9 = vadd.f32 %v556_v52, %v470_v60 }
 0x11e   : > { %v1944_v33 = vpop.eup %1943 }
 0x11f   : > { %v626_v36 = vpop.permute.xlu1 %625  ;;  %v1808_v37 = vpack.c.bf16 %v1944_v33, %v1942_v31  ;;  %v1946_v56 = vpop.eup %1945  ;;  %v808_v31 = vld [vmem:[%s2741_s5 + $0x10] sm:$0xff]  ;;  %v810_v33 = vld [vmem:[%s2741_s5 + $0x20] sm:$0xff] }
 0x120   : > { %1432 = vperm.xlu1 %1924, %v1366_v32   ;;  %v658_v61 = vmul.f32 %v2425_v11, %v626_v36  ;;  %v809_v32 = vld [vmem:[%s2741_s5 + $0x18] sm:$0xff]  ;;  %v814_v36 = vld [vmem:[%s2741_s5 + $0x40] sm:$0xff] }
 0x121   : > { %1809 = vmatprep.subr.bf16.mxu0 %v1808_v37 }
 0x122   : > { %1811 = vmatpush3.bf16.msra.mxu0 %v1808_v37  ;;  %v674_v14 = vadd.f32 %v658_v61, %v572_v9  ;;  %v815_v37 = vld [vmem:[%s2741_s5 + $0x48] sm:$0xff] }
 0x123   : > { %v630_v44 = vpop.permute.xlu1 %629 }
 0x124   : > { %1442 = vperm.xlu1 %1924, %v1368_v41   ;;  %v659_v16 = vmul.f32 %v2425_v11, %v630_v44  ;;  %v786_v49 = vadd.f32 %v757_v15, %v674_v14  ;;  %v819_v41 = vld [vmem:[%s2741_s5 + $0x68] sm:$0xff]  ;;  %v1581_v44 = vld [vmem:[%s2741_s5 + $0x80] sm:$0xff] }
 0x125   : > { %1768 = vmatprep.mubr.f32.mxu1 %v1581_v44 }
 0x126   : > { %v675_v22 = vadd.f32 %v659_v16, %v573_v20 }
 0x128   : > { %v752_v51 = vpop.permute.xlu1 %751 }
 0x129   : > { %v785_v53 = vadd.f32 %v752_v51, %v673_v50  ;;  %v866_v51 = vpop.permute.xlu0 %865 }
 0x12b   : > { %1947 = vtanh.f32 %v785_v53 }
 0x12c   : > { %v445_v59 = vpop.permute.xlu1 %444  ;;  %1949 = vtanh.f32 %v786_v49 }
 0x12d   : > { %v472_v21 = vmul.f32 %v2421_v8, %v445_v59  ;;  %v876_v57 = vpop.permute.xlu0 %875 }
 0x131   : > { %v532_v54 = vpop.permute.xlu1 %531  ;;  %v886_v10 = vpop.permute.xlu0 %885 }
 0x132   : > { %v558_v4 = vmul.f32 %v2411_v5, %v532_v54 }
 0x134   : > { %v574_v24 = vadd.f32 %v558_v4, %v472_v21 }
 0x135   : > { %v1948_v58 = vpop.eup %1947  ;;  %v896_v49 = vpop.permute.xlu0 %895 }
 0x136   : > { %v634_v62 = vpop.permute.xlu1 %633  ;;  %v1812_v0 = vpack.c.bf16 %v1948_v58, %v1946_v56  ;;  %v1950_v5 = vpop.eup %1949 }
 0x137   : > { %v660_v63 = vmul.f32 %v2425_v11, %v634_v62 }
 0x138   : > { %1813 = vmatprep.subr.bf16.mxu0 %v1812_v0 }
 0x139   : > { %1815 = vmatpush3.bf16.msra.mxu0 %v1812_v0  ;;  %v676_v17 = vadd.f32 %v660_v63, %v574_v24 }
 0x13a   : > { %v638_v18 = vpop.permute.xlu1 %637 }
 0x13b   : > { %v661_v19 = vmul.f32 %v2425_v11, %v638_v18 }
 0x13d   : > { %v677_v2 = vadd.f32 %v661_v19, %v575_v1 }
 0x13f   : > { %v762_v55 = vpop.permute.xlu1 %761  ;;  %v789_v26 = vadd.f32 %v772_v23, %v677_v2 }
 0x140   : > { %v787_v25 = vadd.f32 %v762_v55, %v675_v22 }
 0x142   : > { %1951 = vtanh.f32 %v787_v25 }
 0x143   : > { %v767_v13 = vpop.permute.xlu1 %766  ;;  %1953 = vtanh.f32 %v789_v26 }
 0x144   : > { %v788_v27 = vadd.f32 %v767_v13, %v676_v17 }
 0x146   : > { %1955 = vtanh.f32 %v788_v27 }
 0x147   : > { %v841_v47 = vpop.permute.xlu1 %840 }
 0x14b   : > { %v851_v50 = vpop.permute.xlu1 %850 }
 0x14c   : > { %v1952_v28 = vpop.eup %1951 }
 0x14d   : > { %v1816_v29 = vpack.c.bf16 %v1952_v28, %v1950_v5  ;;  %v1954_v45 = vpop.eup %1953  ;;  %v906_v28 = vpop.permute.xlu0 %905 }
 0x14f   : > { %1817 = vmatprep.subr.bf16.mxu0 %v1816_v29  ;;  %v861_v53 = vpop.permute.xlu1 %860 }
 0x150   : > { %v1956_v8 = vpop.eup %1955  ;;  %1819 = vmatpush3.bf16.msra.mxu0 %v1816_v29 }
 0x151   : > { %v1820_v11 = vpack.c.bf16 %v1954_v45, %v1956_v8 }
 0x153   : > { %1821 = vmatprep.subr.bf16.mxu0 %v1820_v11  ;;  %v871_v60 = vpop.permute.xlu1 %870 }
 0x154   : > { %1823 = vmatpush3.bf16.msra.mxu0 %v1820_v11 }
 0x157   : > { %1713 = vmatmul.mubr.f32.vlgmr.msra.gmra.mrb[0].mxu0 %v807_v30  ;;  %v881_v14 = vpop.permute.xlu1 %880 }
 0x158   : > { %1715 = vmatprep.mubr.f32.mxu0 %v808_v31 }
 0x15b   : > { %1716 = vmatmul.mubr.f32.gmra.mrb[2].mxu0 %v809_v32  ;;  %v891_v63 = vpop.permute.xlu1 %890 }
 0x15c   : > { %1718 = vmatprep.mubr.f32.mxu0 %v810_v33 }
 0x15f   : > { %1719 = vmatmul.mubr.f32.gmra.mrb[4].mxu0 %v811_v7  ;;  %v901_v45 = vpop.permute.xlu1 %900 }
 0x160   : > { %1721 = vmatprep.mubr.f32.mxu0 %v812_v34 }
 0x163   : > { %1722 = vmatmul.mubr.f32.gmra.mrb[6].mxu0 %v813_v35  ;;  %v916_v35 = vpop.permute.xlu0 %915 }
 0x164   : > { %1724 = vmatprep.mubr.f32.mxu0 %v814_v36 }
 0x167   : > { %1725 = vmatmul.mubr.f32.gmra.mrb[8].mxu0 %v815_v37 }
 0x168   : > { %1727 = vmatprep.mubr.f32.mxu0 %v816_v38  ;;  %v911_v38 = vpop.permute.xlu1 %910 }
 0x16b   : > { %1728 = vmatmul.mubr.f32.gmra.mrb[10].mxu0 %v817_v39 }
 0x16c   : > { %1730 = vmatprep.mubr.f32.mxu0 %v818_v40 }
 0x16f   : > { %1731 = vmatmul.mubr.f32.gmra.mrb[12].mxu0 %v819_v41 }
 0x170   : > { %1733 = vmatprep.mubr.f32.mxu0 %v820_v42 }
 0x173   : > { %1734 = vmatmul.mubr.f32.gmra.mrb[14].mxu0 %v821_v43 }
 0x22a   : > { %v1714_v59 = vpop.f32.mrb[0].mxu0 }
 0x22b   : > { %v990_v54 = vadd.f32 %v1714_v59, %v846_v46  ;;  %v984_v52 = vpop.f32.mrb[1].mxu0 }
 0x22c   : > { %v985_v56 = vadd.f32 %v984_v52, %v841_v47  ;;  %v1582_v52 = vld [vmem:[%s2741_s5 + $0x88] sm:$0xff] }
 0x22d   : > { %1957 = vtanh.f32 %v990_v54 }
 0x22e   : > { %1959 = vtanh.f32 %v985_v56  ;;  %v1717_v58 = vpop.f32.mrb[2].mxu0  ;;  %v1583_v56 = vld [vmem:[%s2741_s5 + $0x90] sm:$0xff] }
 0x22f   : > { %v1000_v61 = vadd.f32 %v1717_v58, %v856_v48  ;;  %v994_v62 = vpop.f32.mrb[3].mxu0  ;;  %v1585_v58 = vld [vmem:[%s2741_s5 + $0xa0] sm:$0xff] }
 0x230   : > { %v995_v0 = vadd.f32 %v994_v62, %v851_v50  ;;  %v1588_v62 = vld [vmem:[%s2741_s5 + $0xb8] sm:$0xff] }
 0x231   : > { %1961 = vtanh.f32 %v1000_v61  ;;  %v1587_v61 = vld [vmem:[%s2741_s5 + $0xb0] sm:$0xff] }
 0x232   : > { %1963 = vtanh.f32 %v995_v0  ;;  %v1720_v3 = vpop.f32.mrb[4].mxu0  ;;  %v1589_v0 = vld [vmem:[%s2741_s5 + $0xc0] sm:$0xff] }
 0x233   : > { %v1010_v6 = vadd.f32 %v1720_v3, %v866_v51  ;;  %v1004_v9 = vpop.f32.mrb[5].mxu0  ;;  %v1590_v3 = vld [vmem:[%s2741_s5 + $0xc8] sm:$0xff] }
 0x234   : > { %v1005_v12 = vadd.f32 %v1004_v9, %v861_v53  ;;  %v1592_v9 = vld [vmem:[%s2741_s5 + $0xd8] sm:$0xff] }
 0x235   : > { %1965 = vtanh.f32 %v1010_v6  ;;  %v1591_v6 = vld [vmem:[%s2741_s5 + $0xd0] sm:$0xff] }
 0x236   : > { %1967 = vtanh.f32 %v1005_v12  ;;  %v1723_v15 = vpop.f32.mrb[6].mxu0  ;;  %v1594_v12 = vld [vmem:[%s2741_s5 + $0xe8] sm:$0xff] }
 0x237   : > { %v1958_v16 = vpop.eup %1957  ;;  %v1020_v18 = vadd.f32 %v1723_v15, %v876_v57  ;;  %v1014_v1 = vpop.f32.mrb[7].mxu0  ;;  %v1584_v57 = vld [vmem:[%s2741_s5 + $0x98] sm:$0xff] }
 0x238   : > { %v1960_v19 = vpop.eup %1959  ;;  %v1015_v20 = vadd.f32 %v1014_v1, %v871_v60  ;;  %v1586_v60 = vld [vmem:[%s2741_s5 + $0xa8] sm:$0xff]  ;;  %v1596_v15 = vld [vmem:[%s2741_s5 + $0xf8] sm:$0xff] }
 0x239   : > { %1969 = vtanh.f32 %v1020_v18  ;;  %v1824_v4 = vpack.c.bf16 %v1958_v16, %v1960_v19  ;;  %v1116_v16 = vpop.permute.xlu1 %1115  ;;  %v1121_v18 = vpop.permute.xlu0 %1120 }
 0x23a   : > { %1971 = vtanh.f32 %v1015_v20  ;;  %v1726_v2 = vpop.f32.mrb[8].mxu0 }
 0x23b   : > { %v1962_v21 = vpop.eup %1961  ;;  %v1030_v22 = vadd.f32 %v1726_v2, %v886_v10  ;;  %v1024_v55 = vpop.f32.mrb[9].mxu0  ;;  %1825 = vmatprep.subr.bf16.mxu1 %v1824_v4  ;;  %v1593_v10 = vld [vmem:[%s2741_s5 + $0xe0] sm:$0xff] }
 0x23c   : > { %v1964_v23 = vpop.eup %1963  ;;  %v1025_v24 = vadd.f32 %v1024_v55, %v881_v14  ;;  %1827 = vmatpush3.bf16.msra.mxu1 %v1824_v4  ;;  %v1595_v14 = vld [vmem:[%s2741_s5 + $0xf0] sm:$0xff] }
 0x23d   : > { %1973 = vtanh.f32 %v1030_v22  ;;  %v1828_v25 = vpack.c.bf16 %v1962_v21, %v1964_v23  ;;  %v1126_v1 = vpop.permute.xlu1 %1125  ;;  %v1131_v19 = vpop.permute.xlu0 %1130 }
 0x23e   : > { %1975 = vtanh.f32 %v1025_v24  ;;  %v1729_v26 = vpop.f32.mrb[10].mxu0 }
 0x23f   : > { %v1966_v17 = vpop.eup %1965  ;;  %v1040_v13 = vadd.f32 %v1729_v26, %v896_v49  ;;  %v1034_v27 = vpop.f32.mrb[11].mxu0  ;;  %1829 = vmatprep.subr.bf16.mxu1 %v1828_v25 }
 0x240   : > { %v1968_v5 = vpop.eup %1967  ;;  %v1035_v29 = vadd.f32 %v1034_v27, %v891_v63  ;;  %1831 = vmatpush3.bf16.msra.mxu1 %v1828_v25 }
 0x241   : > { %1977 = vtanh.f32 %v1040_v13  ;;  %v1832_v8 = vpack.c.bf16 %v1966_v17, %v1968_v5  ;;  %v1136_v20 = vpop.permute.xlu1 %1135  ;;  %v1141_v4 = vpop.permute.xlu0 %1140 }
 0x242   : > { %1979 = vtanh.f32 %v1035_v29  ;;  %v1732_v11 = vpop.f32.mrb[12].mxu0 }
 0x243   : > { %v1970_v30 = vpop.eup %1969  ;;  %v1050_v31 = vadd.f32 %v1732_v11, %v906_v28  ;;  %v1044_v32 = vpop.f32.mrb[13].mxu0  ;;  %1833 = vmatprep.subr.bf16.mxu1 %v1832_v8 }
 0x244   : > { %v1972_v33 = vpop.eup %1971  ;;  %v1045_v7 = vadd.f32 %v1044_v32, %v901_v45  ;;  %1835 = vmatpush3.bf16.msra.mxu1 %v1832_v8 }
 0x245   : > { %1981 = vtanh.f32 %v1050_v31  ;;  %v1836_v34 = vpack.c.bf16 %v1970_v30, %v1972_v33  ;;  %v1146_v49 = vpop.permute.xlu1 %1145  ;;  %v1151_v2 = vpop.permute.xlu0 %1150 }
 0x246   : > { %1983 = vtanh.f32 %v1045_v7  ;;  %v1735_v36 = vpop.f32.mrb[14].mxu0 }
 0x247   : > { %v1974_v37 = vpop.eup %1973  ;;  %v1060_v39 = vadd.f32 %v1735_v36, %v916_v35  ;;  %v1054_v40 = vpop.f32.mrb[15].mxu0  ;;  %1837 = vmatprep.subr.bf16.mxu1 %v1836_v34 }
 0x248   : > { %v1976_v41 = vpop.eup %1975  ;;  %v1055_v42 = vadd.f32 %v1054_v40, %v911_v38  ;;  %1839 = vmatpush3.bf16.msra.mxu1 %v1836_v34 }
 0x249   : > { %1985 = vtanh.f32 %v1060_v39  ;;  %v1840_v43 = vpack.c.bf16 %v1974_v37, %v1976_v41  ;;  %v1373_v21 = vpop.permute.xlu1 %1372  ;;  %v1378_v63 = vpop.permute.xlu0 %1377 }
 0x24a   : > { %1987 = vtanh.f32 %v1055_v42 }
 0x24b   : > { %v1978_v44 = vpop.eup %1977  ;;  %1841 = vmatprep.subr.bf16.mxu1 %v1840_v43 }
 0x24c   : > { %v1980_v46 = vpop.eup %1979  ;;  %1843 = vmatpush3.bf16.msra.mxu1 %v1840_v43 }
 0x24d   : > { %v1844_v47 = vpack.c.bf16 %v1978_v44, %v1980_v46  ;;  %v1156_v22 = vpop.permute.xlu1 %1155  ;;  %v1383_v55 = vpop.permute.xlu0 %1382 }
 0x24f   : > { %v1982_v48 = vpop.eup %1981  ;;  %1845 = vmatprep.subr.bf16.mxu1 %v1844_v47 }
 0x250   : > { %v1984_v50 = vpop.eup %1983  ;;  %1847 = vmatpush3.bf16.msra.mxu1 %v1844_v47 }
 0x251   : > { %v1848_v51 = vpack.c.bf16 %v1982_v48, %v1984_v50  ;;  %v1161_v23 = vpop.permute.xlu1 %1160  ;;  %v1388_v24 = vpop.permute.xlu0 %1387 }
 0x253   : > { %v1986_v53 = vpop.eup %1985  ;;  %1849 = vmatprep.subr.bf16.mxu1 %v1848_v51 }
 0x254   : > { %v1988_v59 = vpop.eup %1987  ;;  %1851 = vmatpush3.bf16.msra.mxu1 %v1848_v51 }
 0x255   : > { %v1852_v54 = vpack.c.bf16 %v1986_v53, %v1988_v59  ;;  %v1166_v25 = vpop.permute.xlu1 %1165  ;;  %v1393_v26 = vpop.permute.xlu0 %1392 }
 0x257   : > { %1853 = vmatprep.subr.bf16.mxu1 %v1852_v54 }
 0x258   : > { %1855 = vmatpush3.bf16.msra.mxu1 %v1852_v54 }
 0x259   : > { %v1171_v17 = vpop.permute.xlu1 %1170  ;;  %v1398_v28 = vpop.permute.xlu0 %1397 }
 0x25b   : > { %1769 = vmatmul.mubr.f32.vlgmr.msra.gmra.mrb[0].mxu1 %v1582_v52 }
 0x25c   : > { %1771 = vmatprep.mubr.f32.mxu1 %v1583_v56 }
 0x25d   : > { %v1176_v30 = vpop.permute.xlu1 %1175  ;;  %v1403_v32 = vpop.permute.xlu0 %1402 }
 0x25f   : > { %1772 = vmatmul.mubr.f32.gmra.mrb[2].mxu1 %v1584_v57 }
 0x260   : > { %1774 = vmatprep.mubr.f32.mxu1 %v1585_v58 }
 0x261   : > { %v1181_v36 = vpop.permute.xlu1 %1180  ;;  %v1408_v42 = vpop.permute.xlu0 %1407 }
 0x263   : > { %1775 = vmatmul.mubr.f32.gmra.mrb[4].mxu1 %v1586_v60 }
 0x264   : > { %1777 = vmatprep.mubr.f32.mxu1 %v1587_v61 }
 0x265   : > { %v1186_v54 = vpop.permute.xlu1 %1185  ;;  %v1413_v57 = vpop.permute.xlu0 %1412 }
 0x267   : > { %1778 = vmatmul.mubr.f32.gmra.mrb[6].mxu1 %v1588_v62 }
 0x268   : > { %1780 = vmatprep.mubr.f32.mxu1 %v1589_v0 }
 0x26b   : > { %1781 = vmatmul.mubr.f32.gmra.mrb[8].mxu1 %v1590_v3 }
 0x26c   : > { %1783 = vmatprep.mubr.f32.mxu1 %v1591_v6 }
 0x26f   : > { %1784 = vmatmul.mubr.f32.gmra.mrb[10].mxu1 %v1592_v9 }
 0x270   : > { %1786 = vmatprep.mubr.f32.mxu1 %v1593_v10 }
 0x273   : > { %1787 = vmatmul.mubr.f32.gmra.mrb[12].mxu1 %v1594_v12 }
 0x274   : > { %1789 = vmatprep.mubr.f32.mxu1 %v1595_v14  ;;  %v1191_v14 = vpop.permute.xlu1 %1190 }
 0x277   : > { %1790 = vmatmul.mubr.f32.gmra.mrb[14].mxu1 %v1596_v15 }
 0x32e   : > { %v1770_v13 = vpop.f32.mrb[0].mxu1 }
 0x32f   : > { %v1265_v27 = vadd.f32 %v1770_v13, %v1121_v18  ;;  %v1259_v5 = vpop.f32.mrb[1].mxu1  ;;  %v1423_v13 = vpop.permute.xlu1 %1422 }
 0x330   : > { %v1260_v29 = vadd.f32 %v1259_v5, %v1116_v16 }
 0x331   : > { %1989 = vtanh.f32 %v1265_v27 }
 0x332   : > { %1991 = vtanh.f32 %v1260_v29  ;;  %v1773_v45 = vpop.f32.mrb[2].mxu1 }
 0x333   : > { %v1275_v8 = vadd.f32 %v1773_v45, %v1131_v19  ;;  %v1269_v11 = vpop.f32.mrb[3].mxu1 }
 0x334   : > { %v1270_v31 = vadd.f32 %v1269_v11, %v1126_v1 }
 0x335   : > { %1993 = vtanh.f32 %v1275_v8 }
 0x336   : > { %1995 = vtanh.f32 %v1270_v31  ;;  %v1776_v33 = vpop.f32.mrb[4].mxu1 }
 0x337   : > { %v1285_v7 = vadd.f32 %v1776_v33, %v1141_v4  ;;  %v1279_v34 = vpop.f32.mrb[5].mxu1  ;;  %v1433_v33 = vpop.permute.xlu1 %1432 }
 0x338   : > { %v1280_v35 = vadd.f32 %v1279_v34, %v1136_v20 }
 0x339   : > { %1997 = vtanh.f32 %v1285_v7 }
 0x33a   : > { %1999 = vtanh.f32 %v1280_v35  ;;  %v1779_v37 = vpop.f32.mrb[6].mxu1 }
 0x33b   : > { %v1990_v38 = vpop.eup %1989  ;;  %v1295_v39 = vadd.f32 %v1779_v37, %v1151_v2  ;;  %v1289_v40 = vpop.f32.mrb[7].mxu1 }
 0x33c   : > { %v1992_v41 = vpop.eup %1991  ;;  %v1451_v43 = vmul.f32 %v1990_v38, %v1378_v63  ;;  %v1290_v44 = vadd.f32 %v1289_v40, %v1146_v49  ;;  %v1418_v49 = vpop.permute.xlu0 %1417 }
 0x33d   : > { %v1450_v46 = vmul.f32 %v1992_v41, %v1373_v21  ;;  %2001 = vtanh.f32 %v1295_v39 }
 0x33e   : > { %2003 = vtanh.f32 %v1290_v44  ;;  %v1782_v47 = vpop.f32.mrb[8].mxu1  ;;  %v1443_v44 = vpop.permute.xlu1 %1442 }
 0x33f   : > { %v1994_v48 = vpop.eup %1993  ;;  %v1466_v50 = vadd.f32 %v1451_v43, %v1450_v46  ;;  %v1305_v51 = vadd.f32 %v1782_v47, %v1161_v23  ;;  %v1299_v53 = vpop.f32.mrb[9].mxu1 }
 0x340   : > { %v1996_v59 = vpop.eup %1995  ;;  %v1300_v52 = vadd.f32 %v1299_v53, %v1156_v22  ;;  %v1453_v61 = vmul.f32 %v1994_v48, %v1388_v24  ;;  %v1428_v29 = vpop.permute.xlu0 %1427 }
 0x341   : > { %v1452_v56 = vmul.f32 %v1996_v59, %v1383_v55  ;;  %2005 = vtanh.f32 %v1305_v51 }
 0x342   : > { %2007 = vtanh.f32 %v1300_v52  ;;  %v1785_v58 = vpop.f32.mrb[10].mxu1 }
 0x343   : > { %v1998_v60 = vpop.eup %1997  ;;  %v1467_v62 = vadd.f32 %v1466_v50, %v1452_v56  ;;  %v1315_v0 = vadd.f32 %v1785_v58, %v1171_v17  ;;  %v1309_v3 = vpop.f32.mrb[11].mxu1  ;;  %v1488_v58 = vstv %s1487_s22 }
 0x344   : > { %v2000_v6 = vpop.eup %1999  ;;  %v1310_v9 = vadd.f32 %v1309_v3, %v1166_v25  ;;  %v1455_v18 = vmul.f32 %v1998_v60, %v1398_v28  ;;  %v1438_v37 = vpop.permute.xlu0 %1437 }
 0x345   : > { %v1454_v10 = vmul.f32 %v2000_v6, %v1393_v26  ;;  %v1468_v12 = vadd.f32 %v1467_v62, %v1453_v61  ;;  %2009 = vtanh.f32 %v1315_v0 }
 0x346   : > { %2011 = vtanh.f32 %v1310_v9  ;;  %v1788_v15 = vpop.f32.mrb[12].mxu1 }
 0x347   : > { %v2002_v16 = vpop.eup %2001  ;;  %v1469_v1 = vadd.f32 %v1468_v12, %v1454_v10  ;;  %v1325_v19 = vadd.f32 %v1788_v15, %v1181_v36  ;;  %v1319_v20 = vpop.f32.mrb[13].mxu1 }
 0x348   : > { %v2004_v4 = vpop.eup %2003  ;;  %v1320_v2 = vadd.f32 %v1319_v20, %v1176_v30  ;;  %v1457_v23 = vmul.f32 %v2002_v16, %v1408_v42  ;;  %v1448_v48 = vpop.permute.xlu0 %1447 }
 0x349   : > { %v1456_v21 = vmul.f32 %v2004_v4, %v1403_v32  ;;  %v1470_v63 = vadd.f32 %v1469_v1, %v1455_v18  ;;  %2013 = vtanh.f32 %v1325_v19 }
 0x34a   : > { %2015 = vtanh.f32 %v1320_v2  ;;  %v1791_v22 = vpop.f32.mrb[14].mxu1 }
 0x34b   : > { %v2006_v55 = vpop.eup %2005  ;;  %v1471_v24 = vadd.f32 %v1470_v63, %v1456_v21  ;;  %v1335_v25 = vadd.f32 %v1791_v22, %v1191_v14  ;;  %v1329_v26 = vpop.f32.mrb[15].mxu1 }
 0x34c   : > { %v2008_v17 = vpop.eup %2007  ;;  %v1330_v27 = vadd.f32 %v1329_v26, %v1186_v54  ;;  %v1459_v8 = vmul.f32 %v2006_v55, %v1418_v49 }
 0x34d   : > { %v1458_v5 = vmul.f32 %v2008_v17, %v1413_v57  ;;  %v1472_v28 = vadd.f32 %v1471_v24, %v1457_v23  ;;  %2017 = vtanh.f32 %v1335_v25 }
 0x34e   : > { %2019 = vtanh.f32 %v1330_v27 }
 0x34f   : > { %v2010_v45 = vpop.eup %2009  ;;  %v1473_v11 = vadd.f32 %v1472_v28, %v1458_v5 }
 0x350   : > { %v2012_v30 = vpop.eup %2011  ;;  %v1461_v34 = vmul.f32 %v2010_v45, %v1428_v29 }
 0x351   : > { %v1460_v31 = vmul.f32 %v2012_v30, %v1423_v13  ;;  %v1474_v32 = vadd.f32 %v1473_v11, %v1459_v8 }
 0x353   : > { %v2014_v7 = vpop.eup %2013  ;;  %v1475_v35 = vadd.f32 %v1474_v32, %v1460_v31 }
 0x354   : > { %v2016_v36 = vpop.eup %2015  ;;  %v1463_v41 = vmul.f32 %v2014_v7, %v1438_v37 }
 0x355   : > { %v1462_v38 = vmul.f32 %v2016_v36, %v1433_v33  ;;  %v1476_v39 = vadd.f32 %v1475_v35, %v1461_v34 }
 0x357   : > { %v2018_v40 = vpop.eup %2017  ;;  %v1477_v42 = vadd.f32 %v1476_v39, %v1462_v38 }
 0x358   : > { %v2020_v43 = vpop.eup %2019  ;;  %v1465_v50 = vmul.f32 %v2018_v40, %v1448_v48 }
 0x359   : > { %v1464_v46 = vmul.f32 %v2020_v43, %v1443_v44  ;;  %v1478_v47 = vadd.f32 %v1477_v42, %v1463_v41 }
 0x35b   : > { %v1479_v51 = vadd.f32 %v1478_v47, %v1464_v46 }
 0x35d   : > { %v1480_v53 = vadd.f32 %v1479_v51, %v1465_v50 }
 0x35f   : > { %v1481_v59 = vrot.slane %v1480_v53, 4 }
 0x361   : > { %v1482_v54 = vadd.f32 %v1481_v59, %v1480_v53 }
 0x363   : > { %v1483_v52 = vrot.slane %v1482_v54, 2 }
 0x365   : > { %v1484_v56 = vadd.f32 %v1483_v52, %v1482_v54 }
 0x367   : > { %v1485_v57 = vrot.slane %v1484_v56, 1 }
 0x369   : > { %v1486_v60 = vadd.f32 %v1485_v57, %v1484_v56 }
 0x36b   : > { %v1489_v61 = vadd.f32 %v1488_v58, %v1486_v60 }
 0x36d   : > { %1490 = vst [vmem:[%s343_s25] sm:$0x1] %v1489_v61 }
 0x36e   : > { %2034 = shalt.err (!%p2031_p3)
}
 0x36f   : > { %s2035_s18 = scalar_lea.hbm %s2694_s29, 16  ;;  %s2039_s23 = scalar_lea.hbm %s2745_s9, 32 }
 0x370   : > { %p2036_p4 = scmp.ne.s32.totalorder %s2694_s29, %s2035_s18  ;;  %p2040_p9 = scmp.lt.u32.totalorder %s2694_s29, %s2745_s9 }
 0x371   : > { %p2041_p10 = scmp.lt.u32.totalorder %s2039_s23, %s2035_s18  ;;  %p2043_p12 = scmp.lt.u32.totalorder %s2035_s18, %s2694_s29 }
 0x372   : > { %p2037_p7 = pnand %p2036_p4, %p2180_p5 }
 0x373   : > { %p2042_p11 = por %p2041_p10, %p2040_p9 }
 0x374   : > { %p2038_p8 = pneg %p2037_p7 }
 0x375   : > { %p2044_p13 = por %p2043_p12, %p2042_p11 }
 0x377   : > { %p2045_p0 = pnand %p2044_p13, %p2038_p8 }
 0x379   : > { %2048 = shalt.err (!%p2045_p0)
}
 0x37a   : > { %1856 = dma.vmem_to_hbm [thread:$0]  (%p2180_p5), %s2696_s26, 16, %s2694_s29, %s1492_s30  }
 0x37b PF: > { %p1862_p1 = scmp.ge.s32.totalorder %s2083_s14, 2  ;;  %s1516_s28 = sand.u32 1, %s2071_s11  }
 0x37c   : > { %s1517_s10 = scalar_lea.sflag [#allocation4], %s1516_s28 }
 0x37d   : > { %p1859_p2 = pnand %p1862_p1, %p2184_p6 }
 0x37f   : > { %2066 = dma.done.wait (!%p1859_p2), %s1517_s10, 16  }
 0x380   : > { %2068 = vsyncadd (!%p1859_p2), %s1517_s10, 4294967280  ;;  %p20_p3 = scmp.ge.s32.totalorder %s2167_s16, 4   ;;  %s2748_s11 = smov %s2075_s12 }
 0x381   : > { %s2749_s12 = smov %s2079_s13  ;;  %s2750_s13 = smov %s2178_s19 }
 0x382   : > { %s2751_s14 = smov %s2167_s16  ;;  %22 = sbr.rel (!%p20_p3) target bundleno = 5 (0x5), region = 99 }
 0x389   :  { %1521 = vsyncpa [#allocation4], 1 }
 0x38a   :  { %1523 = vsyncpa [#allocation4 + $0x1], 1 }

</bundles_post_ra>
